<compile_context>
chip_gen: v7x
topology: tpu7x:2x2x1
jax: 0.10.0
libtpu: 0.0.40
codegen_flags: <defaults>
</compile_context>

<pallas_src>
import functools

import jax
import jax.numpy as jnp
from jax.experimental import pallas as pl
from jax.experimental.pallas import tpu as pltpu

IGNORE_INDEX = -1
LANE = 128


def _interp_matrix(out_size: int, in_size: int) -> jnp.ndarray:
    """Row-stochastic bilinear interpolation matrix (align_corners=True)."""
    if out_size == 1:
        src = jnp.zeros((1,), jnp.float32)
    else:
        scale = (in_size - 1) / (out_size - 1)
        src = jnp.arange(out_size, dtype=jnp.float32) * scale
    i0 = jnp.clip(jnp.floor(src), 0, in_size - 1).astype(jnp.int32)
    i1 = jnp.minimum(i0 + 1, in_size - 1)
    frac = src - i0.astype(jnp.float32)
    m = ((1.0 - frac)[:, None] * jax.nn.one_hot(i0, in_size, dtype=jnp.float32)
         + frac[:, None] * jax.nn.one_hot(i1, in_size, dtype=jnp.float32))
    return m  # (out_size, in_size)


def _seg_ce_kernel(x_ref, wy_ref, wxt_ref, t_ref, out_ref, *,
                   num_classes, low_w):
    """One grid step = one (batch, H-tile) cell.

    x_ref   : (1, h, C*w)    bf16  low-res logits, channels packed on lanes
    wy_ref  : (tH, h)        bf16  row-interp block for this H tile
    wxt_ref : (w, Wp)        bf16  col-interp matrix (transposed, lane-padded)
    t_ref   : (1, tH, Wp)    int8  targets (-1 = ignore, incl. lane padding)
    out_ref : (1, 1, 2)      f32   SMEM partial [sum_loss, valid_count]
    """
    x = x_ref[0]                     # (h, C*w) bf16
    wy = wy_ref[...]                 # (tH, h)  bf16
    wxt = wxt_ref[...]               # (w, Wp)  bf16
    t = t_ref[0].astype(jnp.int32)   # (tH, Wp)

    # Row interpolation for ALL channels in one MXU matmul.
    rowi = jnp.dot(wy, x, preferred_element_type=jnp.float32)   # (tH, C*w) f32
    rowi = rowi.astype(jnp.bfloat16)

    # Online log-softmax + target-logit gather over channels: one upsampled
    # (tH, Wp) plane live at a time; running (m, se, tgt) tiles are rescaled.
    m = None
    se = None
    tgt = None
    for c in range(num_classes):
        xc = rowi[:, c * low_w:(c + 1) * low_w]                      # (tH, w)
        up_c = jnp.dot(xc, wxt, preferred_element_type=jnp.float32)  # (tH, Wp)
        hit = jnp.where(t == c, up_c, 0.0)
        if c == 0:
            m = up_c
            se = jnp.ones_like(up_c)
            tgt = hit
        else:
            m_new = jnp.maximum(m, up_c)
            se = se * jnp.exp(m - m_new) + jnp.exp(up_c - m_new)
            tgt = tgt + hit
            m = m_new

    lse = m + jnp.log(se)                                            # (tH, Wp)
    valid = t != IGNORE_INDEX
    per_pix = jnp.where(valid, lse - tgt, 0.0)

    out_ref[0, 0, 0] = jnp.sum(per_pix)
    out_ref[0, 0, 1] = jnp.sum(valid.astype(jnp.float32))


def seg_cross_entropy_loss(inputs, targets, *, tile_h=256):
    """inputs: [B, C, h, w] float logits; targets: [B, H, W] int (-1 = ignore)."""
    B, C, h, w = inputs.shape
    _, H, W = targets.shape
    assert C <= 127, "int8 target packing assumes fewer than 128 classes"

    # Lane-dense padded width and H tiling (tile must divide H; multiple of 32
    # keeps the int8 target blocks tile-aligned).
    Wp = ((W + LANE - 1) // LANE) * LANE
    if H % tile_h != 0:
        tile_h = H
    nH = H // tile_h

    # Interpolation matrices (align_corners=True); bf16 into the MXU,
    # f32 accumulation inside the kernel.
    wy = _interp_matrix(H, h).astype(jnp.bfloat16)                   # (H, h)
    wxt = _interp_matrix(W, w).T                                     # (w, W)
    wxt = jnp.pad(wxt, ((0, 0), (0, Wp - W))).astype(jnp.bfloat16)   # (w, Wp)

    # Pack channels along lanes so the row interp is one (tH,h)@(h,C*w) matmul.
    x = jnp.transpose(inputs.astype(jnp.bfloat16), (0, 2, 1, 3)).reshape(
        B, h, C * w)

    # int8 targets, lane-padded with ignore_index (padded columns never count).
    t = jnp.pad(targets.astype(jnp.int8), ((0, 0), (0, 0), (0, Wp - W)),
                constant_values=IGNORE_INDEX)

    kernel = functools.partial(_seg_ce_kernel, num_classes=C, low_w=w)

    partials = pl.pallas_call(
        kernel,
        out_shape=jax.ShapeDtypeStruct((B, nH, 2), jnp.float32),
        grid=(B, nH),
        in_specs=[
            pl.BlockSpec((1, h, C * w), lambda b, i: (b, 0, 0)),
            pl.BlockSpec((tile_h, h), lambda b, i: (i, 0)),
            pl.BlockSpec((w, Wp), lambda b, i: (0, 0)),
            pl.BlockSpec((1, tile_h, Wp), lambda b, i: (b, i, 0)),
        ],
        out_specs=pl.BlockSpec((1, 1, 2), lambda b, i: (b, i, 0),
                               memory_space=pltpu.MemorySpace.SMEM),
        compiler_params=pltpu.CompilerParams(
            dimension_semantics=("parallel", "parallel"),
            vmem_limit_bytes=48 * 1024 * 1024),
    )(x, wy, wxt, t)

    # Mean over non-ignored pixels (nn.CrossEntropyLoss default reduction).
    # Note: if every pixel is ignored this is NaN, matching PyTorch.
    totals = jnp.sum(partials, axis=(0, 1))
    return totals[0] / totals[1]


if __name__ == "__main__":
    # SegCrossEntropyLoss has no learnable parameters; nothing to initialize.
    key = jax.random.PRNGKey(0)
    k_in, k_tgt, k_ign = jax.random.split(key, 3)

    B, C = 2, 4
    h, w = 8, 8          # low-res logits
    H, W = 16, 16        # target (label) resolution

    inputs = jax.random.normal(k_in, (B, C, h, w), dtype=jnp.float32)
    targets = jax.random.randint(k_tgt, (B, H, W), 0, C, dtype=jnp.int32)
    # sprinkle some ignore_index pixels
    ignore_mask = jax.random.uniform(k_ign, (B, H, W)) < 0.1
    targets = jnp.where(ignore_mask, IGNORE_INDEX, targets)

    loss = seg_cross_entropy_loss(inputs, targets)
    jax.block_until_ready(loss)
    assert loss.shape == () and jnp.isfinite(loss)
    print("KERNEL_OK")
</pallas_src>

<mosaic_0001>
module attributes {stable_mosaic.version = 11 : i64} {
  func.func @_seg_ce_kernel(%arg0: i32, %arg1: i32, %arg2: memref<1x8x32xbf16, #tpu.memory_space<vmem>>, %arg3: memref<16x8xbf16, #tpu.memory_space<vmem>>, %arg4: memref<8x128xbf16, #tpu.memory_space<vmem>>, %arg5: memref<1x16x128xi8, #tpu.memory_space<vmem>>, %arg6: memref<1x1x2xf32, #tpu.memory_space<smem>>) attributes {dimension_semantics = [#tpu.dimension_semantics<parallel>, #tpu.dimension_semantics<parallel>], iteration_bounds = array<i64: 2, 1>, scalar_prefetch = 0 : i64, scratch_operands = 0 : i64, tpu.core_type = #tpu.core_type<tc>, window_params = [{transform_indices = @transform_0, window_bounds = array<i64: 1, 8, 32>}, {transform_indices = @transform_1, window_bounds = array<i64: 16, 8>}, {pipeline_mode = #tpu.pipeline_mode<synchronous>, transform_indices = @transform_2, window_bounds = array<i64: 8, 128>}, {transform_indices = @transform_3, window_bounds = array<i64: 1, 16, 128>}, {transform_indices = @transform_4, window_bounds = array<i64: 1, 1, 2>}]} {
    %c0 = arith.constant 0 : index
    %c0_0 = arith.constant 0 : index
    %c0_1 = arith.constant 0 : index
    %0 = vector.load %arg2[%c0, %c0_0, %c0_1] : memref<1x8x32xbf16, #tpu.memory_space<vmem>>, vector<1x8x32xbf16>
    %1 = vector.shape_cast %0 : vector<1x8x32xbf16> to vector<8x32xbf16>
    %c0_2 = arith.constant 0 : index
    %c0_3 = arith.constant 0 : index
    %2 = vector.load %arg3[%c0_2, %c0_3] : memref<16x8xbf16, #tpu.memory_space<vmem>>, vector<16x8xbf16>
    %c0_4 = arith.constant 0 : index
    %c0_5 = arith.constant 0 : index
    %3 = vector.load %arg4[%c0_4, %c0_5] : memref<8x128xbf16, #tpu.memory_space<vmem>>, vector<8x128xbf16>
    %c0_6 = arith.constant 0 : index
    %c0_7 = arith.constant 0 : index
    %c0_8 = arith.constant 0 : index
    %4 = vector.load %arg5[%c0_6, %c0_7, %c0_8] : memref<1x16x128xi8, #tpu.memory_space<vmem>>, vector<1x16x128xi8>
    %5 = vector.shape_cast %4 : vector<1x16x128xi8> to vector<16x128xi8>
    %6 = arith.extsi %5 : vector<16x128xi8> to vector<16x128xi32>
    %cst = arith.constant dense<0.000000e+00> : vector<16x32xf32>
    %7 = tpu.matmul %2, %1, %cst {dimension_numbers = #tpu.dot_dimension_numbers<[1], [0], [0], [1], [0, 0, 1, 1], [], []>} : vector<16x8xbf16>, vector<8x32xbf16>, vector<16x32xf32> -> vector<16x32xf32>
    %8 = arith.truncf %7 : vector<16x32xf32> to vector<16x32xbf16>
    %9 = vector.extract_strided_slice %8 {offsets = [0, 0], sizes = [16, 8], strides = [1, 1]} : vector<16x32xbf16> to vector<16x8xbf16>
    %cst_9 = arith.constant dense<0.000000e+00> : vector<16x128xf32>
    %10 = tpu.matmul %9, %3, %cst_9 {dimension_numbers = #tpu.dot_dimension_numbers<[1], [0], [0], [1], [0, 0, 1, 1], [], []>} : vector<16x8xbf16>, vector<8x128xbf16>, vector<16x128xf32> -> vector<16x128xf32>
    %c0_i32 = arith.constant 0 : i32
    %11 = vector.broadcast %c0_i32 : i32 to vector<16x128xi32>
    %12 = arith.cmpi eq, %6, %11 : vector<16x128xi32>
    %cst_10 = arith.constant 0.000000e+00 : f32
    %13 = vector.broadcast %cst_10 : f32 to vector<16x128xf32>
    %14 = arith.select %12, %10, %13 : vector<16x128xi1>, vector<16x128xf32>
    %cst_11 = arith.constant 1.000000e+00 : f32
    %15 = vector.broadcast %cst_11 : f32 to vector<16x128xf32>
    %16 = vector.extract_strided_slice %8 {offsets = [0, 8], sizes = [16, 8], strides = [1, 1]} : vector<16x32xbf16> to vector<16x8xbf16>
    %cst_12 = arith.constant dense<0.000000e+00> : vector<16x128xf32>
    %17 = tpu.matmul %16, %3, %cst_12 {dimension_numbers = #tpu.dot_dimension_numbers<[1], [0], [0], [1], [0, 0, 1, 1], [], []>} : vector<16x8xbf16>, vector<8x128xbf16>, vector<16x128xf32> -> vector<16x128xf32>
    %c1_i32 = arith.constant 1 : i32
    %18 = vector.broadcast %c1_i32 : i32 to vector<16x128xi32>
    %19 = arith.cmpi eq, %6, %18 : vector<16x128xi32>
    %cst_13 = arith.constant 0.000000e+00 : f32
    %20 = vector.broadcast %cst_13 : f32 to vector<16x128xf32>
    %21 = arith.select %19, %17, %20 : vector<16x128xi1>, vector<16x128xf32>
    %22 = arith.maximumf %10, %17 : vector<16x128xf32>
    %23 = arith.subf %10, %22 : vector<16x128xf32>
    %24 = math.exp %23 : vector<16x128xf32>
    %25 = arith.mulf %15, %24 : vector<16x128xf32>
    %26 = arith.subf %17, %22 : vector<16x128xf32>
    %27 = math.exp %26 : vector<16x128xf32>
    %28 = arith.addf %25, %27 : vector<16x128xf32>
    %29 = arith.addf %14, %21 : vector<16x128xf32>
    %30 = vector.extract_strided_slice %8 {offsets = [0, 16], sizes = [16, 8], strides = [1, 1]} : vector<16x32xbf16> to vector<16x8xbf16>
    %cst_14 = arith.constant dense<0.000000e+00> : vector<16x128xf32>
    %31 = tpu.matmul %30, %3, %cst_14 {dimension_numbers = #tpu.dot_dimension_numbers<[1], [0], [0], [1], [0, 0, 1, 1], [], []>} : vector<16x8xbf16>, vector<8x128xbf16>, vector<16x128xf32> -> vector<16x128xf32>
    %c2_i32 = arith.constant 2 : i32
    %32 = vector.broadcast %c2_i32 : i32 to vector<16x128xi32>
    %33 = arith.cmpi eq, %6, %32 : vector<16x128xi32>
    %cst_15 = arith.constant 0.000000e+00 : f32
    %34 = vector.broadcast %cst_15 : f32 to vector<16x128xf32>
    %35 = arith.select %33, %31, %34 : vector<16x128xi1>, vector<16x128xf32>
    %36 = arith.maximumf %22, %31 : vector<16x128xf32>
    %37 = arith.subf %22, %36 : vector<16x128xf32>
    %38 = math.exp %37 : vector<16x128xf32>
    %39 = arith.mulf %28, %38 : vector<16x128xf32>
    %40 = arith.subf %31, %36 : vector<16x128xf32>
    %41 = math.exp %40 : vector<16x128xf32>
    %42 = arith.addf %39, %41 : vector<16x128xf32>
    %43 = arith.addf %29, %35 : vector<16x128xf32>
    %44 = vector.extract_strided_slice %8 {offsets = [0, 24], sizes = [16, 8], strides = [1, 1]} : vector<16x32xbf16> to vector<16x8xbf16>
    %cst_16 = arith.constant dense<0.000000e+00> : vector<16x128xf32>
    %45 = tpu.matmul %44, %3, %cst_16 {dimension_numbers = #tpu.dot_dimension_numbers<[1], [0], [0], [1], [0, 0, 1, 1], [], []>} : vector<16x8xbf16>, vector<8x128xbf16>, vector<16x128xf32> -> vector<16x128xf32>
    %c3_i32 = arith.constant 3 : i32
    %46 = vector.broadcast %c3_i32 : i32 to vector<16x128xi32>
    %47 = arith.cmpi eq, %6, %46 : vector<16x128xi32>
    %cst_17 = arith.constant 0.000000e+00 : f32
    %48 = vector.broadcast %cst_17 : f32 to vector<16x128xf32>
    %49 = arith.select %47, %45, %48 : vector<16x128xi1>, vector<16x128xf32>
    %50 = arith.maximumf %36, %45 : vector<16x128xf32>
    %51 = arith.subf %36, %50 : vector<16x128xf32>
    %52 = math.exp %51 : vector<16x128xf32>
    %53 = arith.mulf %42, %52 : vector<16x128xf32>
    %54 = arith.subf %45, %50 : vector<16x128xf32>
    %55 = math.exp %54 : vector<16x128xf32>
    %56 = arith.addf %53, %55 : vector<16x128xf32>
    %57 = arith.addf %43, %49 : vector<16x128xf32>
    %58 = math.log %56 : vector<16x128xf32>
    %59 = arith.addf %50, %58 : vector<16x128xf32>
    %c-1_i32 = arith.constant -1 : i32
    %60 = vector.broadcast %c-1_i32 : i32 to vector<16x128xi32>
    %61 = arith.cmpi ne, %6, %60 : vector<16x128xi32>
    %62 = arith.subf %59, %57 : vector<16x128xf32>
    %cst_18 = arith.constant 0.000000e+00 : f32
    %63 = vector.broadcast %cst_18 : f32 to vector<16x128xf32>
    %64 = arith.select %61, %62, %63 : vector<16x128xi1>, vector<16x128xf32>
    %65 = vector.shape_cast %64 : vector<16x128xf32> to vector<1x16x128xf32>
    %cst_19 = arith.constant dense<0.000000e+00> : vector<1xf32>
    %66 = vector.multi_reduction <add>, %65, %cst_19 [1, 2] : vector<1x16x128xf32> to vector<1xf32>
    %67 = vector.shape_cast %66 : vector<1xf32> to vector<1x1x1xf32>
    %68 = vector.extract %67[0, 0, 0] : f32 from vector<1x1x1xf32>
    %c0_20 = arith.constant 0 : index
    %c0_21 = arith.constant 0 : index
    %c0_22 = arith.constant 0 : index
    %69 = memref.load %arg6[%c0_20, %c0_21, %c0_22] : memref<1x1x2xf32, #tpu.memory_space<smem>>
    memref.store %68, %arg6[%c0_20, %c0_21, %c0_22] : memref<1x1x2xf32, #tpu.memory_space<smem>>
    %70 = arith.extui %61 : vector<16x128xi1> to vector<16x128xi32>
    %71 = arith.sitofp %70 : vector<16x128xi32> to vector<16x128xf32>
    %72 = vector.shape_cast %71 : vector<16x128xf32> to vector<1x16x128xf32>
    %cst_23 = arith.constant dense<0.000000e+00> : vector<1xf32>
    %73 = vector.multi_reduction <add>, %72, %cst_23 [1, 2] : vector<1x16x128xf32> to vector<1xf32>
    %74 = vector.shape_cast %73 : vector<1xf32> to vector<1x1x1xf32>
    %75 = vector.extract %74[0, 0, 0] : f32 from vector<1x1x1xf32>
    %c0_24 = arith.constant 0 : index
    %c0_25 = arith.constant 0 : index
    %c1 = arith.constant 1 : index
    %76 = memref.load %arg6[%c0_24, %c0_25, %c1] : memref<1x1x2xf32, #tpu.memory_space<smem>>
    memref.store %75, %arg6[%c0_24, %c0_25, %c1] : memref<1x1x2xf32, #tpu.memory_space<smem>>
    return
  }
  func.func @transform_0(%arg0: i32, %arg1: i32) -> (i32, i32, i32) {
    %c0_i32 = arith.constant 0 : i32
    %c0_i32_0 = arith.constant 0 : i32
    %c0_i32_1 = arith.constant 0 : i32
    return %arg0, %c0_i32, %c0_i32_0 : i32, i32, i32
  }
  func.func @transform_1(%arg0: i32, %arg1: i32) -> (i32, i32) {
    %c0_i32 = arith.constant 0 : i32
    %c0_i32_0 = arith.constant 0 : i32
    return %arg1, %c0_i32 : i32, i32
  }
  func.func @transform_2(%arg0: i32, %arg1: i32) -> (i32, i32) {
    %c0_i32 = arith.constant 0 : i32
    %c0_i32_0 = arith.constant 0 : i32
    %c0_i32_1 = arith.constant 0 : i32
    return %c0_i32, %c0_i32_0 : i32, i32
  }
  func.func @transform_3(%arg0: i32, %arg1: i32) -> (i32, i32, i32) {
    %c0_i32 = arith.constant 0 : i32
    %c0_i32_0 = arith.constant 0 : i32
    return %arg0, %arg1, %c0_i32 : i32, i32, i32
  }
  func.func @transform_4(%arg0: i32, %arg1: i32) -> (i32, i32, i32) {
    %c0_i32 = arith.constant 0 : i32
    %c0_i32_0 = arith.constant 0 : i32
    return %arg0, %arg1, %c0_i32 : i32, i32, i32
  }
}

</mosaic_0001>

<bundles_post_ra>
// kernel: tpu_custom_call.1
= control target key start
LH: loop header
LB: loop body
LE: loop exit
PB: predicated region body
PF: predicated region fallthrough
CT: control target
= control target key end

     0   :  { %9 = vsyncpa [#allocation3], 0  ;;  %s1252_s0 = inlined_call_operand.vmem [shape: bf16[2,8,32], index: 0, kind: input, shape index: {}]   ;;  %s1253_s1 = inlined_call_operand.vmem [shape: bf16[16,8], index: 1, kind: input, shape index: {}]   ;;  %s1254_s2 = inlined_call_operand.hbm [shape: bf16[8,128], index: 2, kind: input, shape index: {}]   ;;  %s1255_s3 = inlined_call_operand.vmem [shape: s8[2,16,128], index: 3, kind: input, shape index: {}]   ;;  %s1256_s4 = inlined_call_operand.hbm [shape: f32[2,1,2], index: 4, kind: output, shape index: {}]  }
   0x1   :  { %10 = vsyncpa [#allocation4], 0 }
   0x2   :  { %12 = vsyncpa [#allocation4 + $0x1], 0  ;;  %s1066_s15 = smov 0   ;;  %s1068_s16 = smov 0  }
   0x3   :  { %s1070_s17 = smov 0   ;;  %s1072_s18 = smov 0  }
   0x4   :  { %s1074_s19 = smov 0   ;;  %s1076_s20 = smov 0  }
   0x5 LB: > { %s769_s21 = sadd.s32 4294967295, %s1033_s20   ;;  %s770_s22 = sadd.s32 4294967294, %s1033_s20   ;;  %s1033_s20 = sphi %s1076_s20, %s18_s20   ;;  %s1029_s19 = sphi %s1074_s19, %s1275_s19   ;;  %s1025_s18 = sphi %s1072_s18, %s1274_s18   ;;  %s1021_s17 = sphi %s1070_s17, %s1273_s17   ;;  %s1017_s16 = sphi %s1068_s16, %s1272_s16   ;;  %s1013_s15 = sphi %s1066_s15, %s1271_s15  }
   0x6   : > { %s30_s23 = sadd.s32 1, %s1029_s19  ;;  %s140_s24 = sadd.s32 1, %s1021_s17 }
   0x7   : > { %p32_p0 = scmp.ge.s32.totalorder %s30_s23, 2  ;;  %p150_p1 = scmp.ne.s32.totalorder %s1021_s17, %s1017_s16 }
   0x8   : > { %p151_p2 = scmp.eq.s32.totalorder %s769_s21, 1  ;;  %p156_p3 = scmp.ne.s32.totalorder %s1017_s16, %s1013_s15 }
   0x9   : > { %s1277_s23 = smov (%p32_p0, %s30_s23), 0  ;;  %p157_p5 = scmp.eq.s32.totalorder %s770_s22, 1 }
   0xa   : > { %p1106_p4 = por %p151_p2, %p150_p1  ;;  %s135_s26 = ssub.s32 %s1029_s19, %s1277_s23 }
   0xb   : > { %p771_p6 = scmp.ge.s32.totalorder %s1033_s20, 1  ;;  %p138_p7 = scmp.eq.s32.totalorder %s135_s26, 0 }
   0xc   : > { %s1262_s25 = scalar_select %p1106_p4, 1, 0 }
   0xd   : > { %p1113_p8 = por %p157_p5, %p156_p3  ;;  %p164_p9 = scmp.lt.s32.totalorder %s1033_s20, 3 }
   0xe   : > { %s1119_s28 = scalar_select %p138_p7, %s1021_s17, %s140_s24  }
   0xf   : > { %s1263_s27 = scalar_select %p1113_p8, 1, 0 }
  0x10   : > { %p1121_p10 = pnand %p771_p6, %p164_p9  ;;  %p1125_p11 = scmp.eq.s32.totalorder %s769_s21, 0 }
  0x11   : > { %s1035_s5 = smov [#allocation2]   ;;  %s937_s10 = scalar_lea.hbm %s1254_s2, 64 }
  0x12   : > { %s1264_s29 = scalar_select %p1121_p10, 1, 0 }
  0x13   : > { %s1265_s30 = scalar_select %p1125_p11, 1, 0 }
  0x14   : > { %p848_p12 = pneg %p1121_p10  ;;  %s186_s6 = sshll.u32 %s1035_s5, 4  ;;  %s187_s6 = int_to_ptr.vmem [resolvable:$true] %s186_s6 }
  0x15   : > { %p938_p0 = scmp.ne.s32.totalorder %s1254_s2, %s937_s10  ;;  %p944_p5 = scmp.lt.u32.totalorder %s937_s10, %s1254_s2 }
  0x16   : > { %p1133_p13 = pnand %p1125_p11, %p848_p12 }
  0x18   : > { %p939_p1 = pneg %p1133_p13 }
  0x1a   : > { %p940_p2 = pnand %p939_p1, %p938_p0 }
  0x1c   : > { %p941_p3 = pneg %p940_p2 }
  0x1e   : > { %p946_p6 = pnand %p944_p5, %p941_p3 }
  0x20   : > { %949 = shalt.err (!%p946_p6)
}
  0x21   : > { %s950_s21 = scalar_lea.vmem %s187_s6, 64  ;;  %p958_p8 = scmp.lt.s32.totalorder %s187_s6, %s187_s6 }
  0x22   : > { %p951_p7 = scmp.ne.s32.totalorder %s187_s6, %s950_s21  ;;  %p959_p4 = scmp.lt.s32.totalorder %s950_s21, %s950_s21 }
  0x24   : > { %p953_p9 = pnand %p951_p7, %p939_p1  ;;  %p960_p11 = por %p959_p4, %p958_p8 }
  0x26   : > { %p954_p12 = pneg %p953_p9 }
  0x28   : > { %p961_p10 = pnand %p960_p11, %p954_p12 }
  0x2a   : > { %964 = shalt.err (!%p961_p10)
}
  0x2b   : > { %851 = dma.hbm_to_vmem [thread:$0]  (!%p1133_p13), %s1254_s2, 64, %s187_s6, [#allocation3]  }
  0x2c   : > { %p1267_p0 = scmp.ne.s32.totalorder %s1264_s29, 0 }
  0x2d   : > { %p1268_p2 = scmp.ne.s32.totalorder (!%p1267_p0), %s1265_s30, 0 }
  0x2e   : > { %219 = sbr.rel (%p1267_p0) target bundleno = 869 (0x365), region = 36 }
  0x35   : > { %1004 = dma.done.wait (%p1268_p2), [#allocation3], 64  }
  0x36   : > { %1006 = vsyncadd (%p1268_p2), [#allocation3], 4294967232  ;;  %p258_p4 = scmp.lt.s32.totalorder %s1025_s18, 1  ;;  %v1036_v0 = vmov 0.0   ;;  %vm1037_vm0 = vmmov 0   ;;  %vm296_vm1 = vcmask 1043456  }
  0x37   : > { %808 = vmatprep.subr.bf16.mxu0 %v1036_v0  ;;  %810 = vmatprep.mubr.msk.bf16.mxu0 %vm1037_vm0, %v1036_v0  ;;  %v282_v2 = vld [vmem:[#allocation2] sm:$0xf]  ;;  %vm292_vm2 = vcmask 64512   ;;  %s1038_s9 = smov 104   ;;  %s1039_s10 = smov 120  }
  0x38   : > { %s1162_s26 = scalar_select %p258_p4, %s1025_s18, 1  ;;  %814 = vmatprep.subr.bf16.mxu1 %v1036_v0  ;;  %816 = vmatprep.mubr.msk.bf16.mxu1 %vm1037_vm0, %v1036_v0  ;;  %v346_v4 = vsel %vm296_vm1, %v282_v2, 0  ;;  %v908_v5 = vld [vmem:[%s1253_s1] sm:$0xff]  }
  0x39   : > { %815 = vmatpush3.bf16.msra.mxu1 %v346_v4  ;;  %s1040_s11 = smov 112   ;;  %s255_s21 = sand.u32 1, %s1017_s16  }
  0x3a   : > { %s778_s29 = sshll.u32 %s1162_s26, 2  ;;  %826 = vmatprep.subr.bf16.mxu1 %v1036_v0  ;;  %s777_s22 = sshll.u32 %s255_s21, 7 }
  0x3b   : > { %s261_s6 = scalar_lea.vmem %s1252_s0, %s778_s29  ;;  %s276_s14 = scalar_lea.vmem %s1255_s3, %s778_s29 }
  0x3c   : > { %v279_v1 = vld [vmem:[%s261_s6] sm:$0xf]  ;;  %s790_s24 = sshll.u32 %s1025_s18, 4  ;;  %s257_s26 = scalar_lea.smem [#allocation5], %s777_s22 }
  0x3d   : > { %v298_v3 = vsel %vm296_vm1, %v279_v1, 0  ;;  %v795_v18 = vld [vmem:[%s276_s14] sm:$0xf]   ;;  %s640_s29 = scalar_lea.smem %s257_s26, 1 [#allocation5]  ;;  %s655_s7 = scalar_lea.hbm %s1256_s4, %s790_s24 }
  0x3e   : > { %809 = vmatpush3.bf16.msra.mxu0 %v298_v3  ;;  %v1187_v19 = vunpack.c.0.s8 %v795_v18  ;;  %v1189_v20 = vunpack.c.1.s8 %v795_v18  ;;  %p1269_p10 = scmp.ne.s32.totalorder %s1262_s25, 0  ;;  %s969_s18 = scalar_lea.hbm %s1256_s4, 32 }
  0x3f   : > { %820 = vmatprep.subr.bf16.mxu0 %v1036_v0  ;;  %p970_p1 = scmp.lt.u32.totalorder %s655_s7, %s1256_s4 }
  0x40   : > { %vm608_vm3 = vcmp.ne.s32.totalorder %v1187_v19, 4294967295  ;;  %vm609_vm4 = vcmp.ne.s32.totalorder %v1189_v20, 4294967295  ;;  %vm389_vm5 = vcmp.eq.s32.totalorder %v1187_v19, 0  ;;  %vm440_vm6 = vcmp.eq.s32.totalorder %v1187_v19, 1 }
  0x41   : > { %811 = vmatmul.mubr.msk.bf16.vlgmr.msra.gmra.mrb[0].mxu0 %vm292_vm2, %v908_v5  ;;  %v787_v21 = vsel %vm608_vm3, 1.0, %v1036_v0  ;;  %v788_v22 = vsel %vm609_vm4, 1.0, %v1036_v0  ;;  %vm390_vm7 = vcmp.eq.s32.totalorder %v1189_v20, 0  ;;  %vm441_vm8 = vcmp.eq.s32.totalorder %v1189_v20, 1 }
  0x42   : > { %821 = vmatpush3.bf16.msra.mxu0 %v346_v4  ;;  %822 = vmatprep.mubr.msk.bf16.mxu0 %vm1037_vm0, %v1036_v0  ;;  %v630_v23 = vadd.f32 %v788_v22, %v787_v21  ;;  %vm508_vm9 = vcmp.eq.s32.totalorder %v1187_v19, 2  ;;  %vm509_vm10 = vcmp.eq.s32.totalorder %v1189_v20, 2  ;;  %vm578_vm11 = vcmp.eq.s32.totalorder %v1187_v19, 3 }
  0x43   : > { %832 = vmatprep.subr.bf16.mxu0 %v1036_v0  ;;  %vm579_vm12 = vcmp.eq.s32.totalorder %v1189_v20, 3 }
 0x114   : > { %v334_v6 = vpop.f32.mrb[0].mxu0 }
 0x115   : > { %v812_v7 = vpop.f32.mrb[1].mxu0 }
 0x116   : > { %v337_v8 = vpop.f32.mrb[2].mxu0 }
 0x117   : > { %v341_v9 = vpack.c.bf16 %v337_v8, %v334_v6  ;;  %v813_v10 = vpop.f32.mrb[3].mxu0 }
 0x119   : > { %532 = vrot.lane.b32.xlu1 %v341_v9, %s1038_s9  ;;  %394 = vrot.lane.b32.xlu0 %v341_v9, %s1039_s10  ;;  %s643_s9 = scalar_lea.sflag [#allocation4], %s255_s21  ;;  %s965_s10 = scalar_lea.hbm %s655_s7, 16 }
 0x11a   : > { %817 = vmatmul.mubr.msk.bf16.vlgmr.msra.gmra.mrb[0].mxu1 %vm292_vm2, %v341_v9  ;;  %p966_p8 = scmp.ne.s32.totalorder %s655_s7, %s965_s10  ;;  %p971_p3 = scmp.lt.u32.totalorder %s969_s18, %s965_s10 }
 0x11b   : > { %827 = vmatpush3.bf16.msra.mxu1 %v346_v4  ;;  %828 = vmatprep.mubr.msk.bf16.mxu1 %vm1037_vm0, %v1036_v0  ;;  %p973_p6 = scmp.lt.u32.totalorder %s965_s10, %s655_s7 }
 0x11c   : > { %p967_p11 = pnand %p966_p8, %p1269_p10  ;;  %p972_p5 = por %p971_p3, %p970_p1 }
 0x11d   : > { %462 = vrot.lane.b32.xlu0 %v341_v9, %s1040_s11 }
 0x11e   : > { %p968_p13 = pneg %p967_p11  ;;  %p974_p7 = por %p973_p6, %p972_p5 }
 0x120   : > { %p975_p9 = pnand %p974_p7, %p968_p13 }
 0x13c   : > { %631 = vadd.xlane.f32.xlu0 %v630_v23 }
 0x18b   : > { %v395_v11 = vpop.permute.xlu0 %394  ;;  %v533_v13 = vpop.permute.xlu1 %532 }
 0x18c   : > { %823 = vmatmul.mubr.msk.bf16.vlgmr.msra.gmra.mrb[4].mxu0 %vm292_vm2, %v395_v11 }
 0x18d   : > { %833 = vmatpush3.bf16.msra.mxu0 %v346_v4  ;;  %834 = vmatprep.mubr.msk.bf16.mxu0 %vm1037_vm0, %v1036_v0 }
 0x18f   : > { %v463_v12 = vpop.permute.xlu0 %462 }
 0x190   : > { %829 = vmatmul.mubr.msk.bf16.vlgmr.msra.gmra.mrb[4].mxu1 %vm292_vm2, %v463_v12 }
 0x194   : > { %835 = vmatmul.mubr.msk.bf16.vlgmr.msra.gmra.mrb[8].mxu0 %vm292_vm2, %v533_v13 }
 0x1ed   : > { %v382_v14 = vpop.f32.mrb[0].mxu1 }
 0x1ee   : > { %v818_v15 = vpop.f32.mrb[1].mxu1  ;;  %v391_v25 = vsel %vm389_vm5, %v382_v14, 0.0 }
 0x1ef   : > { %v385_v16 = vpop.f32.mrb[2].mxu1 }
 0x1f0   : > { %v819_v17 = vpop.f32.mrb[3].mxu1  ;;  %v392_v29 = vsel %vm390_vm7, %v385_v16, 0.0 }
 0x25f   : > { %v433_v24 = vpop.f32.mrb[4].mxu0 }
 0x260   : > { %v442_v26 = vsel %vm440_vm6, %v433_v24, 0.0  ;;  %v444_v27 = vmax.f32 %v382_v14, %v433_v24  ;;  %v824_v28 = vpop.f32.mrb[5].mxu0 }
 0x261   : > { %v460_v30 = vadd.f32 %v442_v26, %v391_v25  ;;  %v436_v31 = vpop.f32.mrb[6].mxu0 }
 0x262   : > { %v446_v32 = vsub.f32 %v382_v14, %v444_v27  ;;  %v452_v33 = vsub.f32 %v433_v24, %v444_v27  ;;  %v443_v34 = vsel %vm441_vm8, %v436_v31, 0.0  ;;  %v445_v35 = vmax.f32 %v385_v16, %v436_v31  ;;  %v825_v36 = vpop.f32.mrb[7].mxu0 }
 0x263   : > { %v461_v37 = vadd.f32 %v443_v34, %v392_v29  ;;  %v501_v38 = vpop.f32.mrb[4].mxu1 }
 0x264   : > { %v448_v39 = vmul.f32 1.442695, %v446_v32  ;;  %v454_v40 = vmul.f32 1.442695, %v452_v33  ;;  %v447_v41 = vsub.f32 %v385_v16, %v445_v35  ;;  %v453_v42 = vsub.f32 %v436_v31, %v445_v35  ;;  %v830_v43 = vpop.f32.mrb[5].mxu1 }
 0x265   : > { %v510_v44 = vsel %vm508_vm9, %v501_v38, 0.0  ;;  %v512_v45 = vmax.f32 %v444_v27, %v501_v38  ;;  %v504_v46 = vpop.f32.mrb[6].mxu1 }
 0x266   : > { %909 = vpow2.f32 %v448_v39  ;;  %v450_v47 = vmul.f32 1.442695, %v447_v41  ;;  %v456_v48 = vmul.f32 1.442695, %v453_v42  ;;  %v530_v49 = vadd.f32 %v510_v44, %v460_v30  ;;  %v831_v50 = vpop.f32.mrb[7].mxu1 }
 0x267   : > { %911 = vpow2.f32 %v454_v40  ;;  %v514_v51 = vsub.f32 %v444_v27, %v512_v45  ;;  %v522_v52 = vsub.f32 %v501_v38, %v512_v45  ;;  %v511_v53 = vsel %vm509_vm10, %v504_v46, 0.0  ;;  %v571_v54 = vpop.f32.mrb[8].mxu0 }
 0x268   : > { %913 = vpow2.f32 %v450_v47  ;;  %v513_v55 = vmax.f32 %v445_v35, %v504_v46  ;;  %v531_v56 = vadd.f32 %v511_v53, %v461_v37  ;;  %v580_v57 = vsel %vm578_vm11, %v571_v54, 0.0  ;;  %v836_v58 = vpop.f32.mrb[9].mxu0 }
 0x269   : > { %915 = vpow2.f32 %v456_v48  ;;  %v516_v59 = vmul.f32 1.442695, %v514_v51  ;;  %v524_v60 = vmul.f32 1.442695, %v522_v52  ;;  %v582_v61 = vmax.f32 %v512_v45, %v571_v54  ;;  %v574_v62 = vpop.f32.mrb[10].mxu0  ;;  %v632_v51 = vpop.xlane.xlu0 %631 }
 0x26a   : > { %v515_v63 = vsub.f32 %v445_v35, %v513_v55  ;;  %v523_v0 = vsub.f32 %v504_v46, %v513_v55  ;;  %v600_v1 = vadd.f32 %v580_v57, %v530_v49  ;;  %v581_v2 = vsel %vm579_vm12, %v574_v62, 0.0  ;;  %v837_v3 = vpop.f32.mrb[11].mxu0 }
 0x26b   : > { %917 = vpow2.f32 %v516_v59  ;;  %v584_v4 = vsub.f32 %v512_v45, %v582_v61  ;;  %v592_v5 = vsub.f32 %v571_v54, %v582_v61  ;;  %v583_v6 = vmax.f32 %v513_v55, %v574_v62 }
 0x26c   : > { %919 = vpow2.f32 %v524_v60  ;;  %v518_v7 = vmul.f32 1.442695, %v515_v63  ;;  %v526_v8 = vmul.f32 1.442695, %v523_v0  ;;  %v601_v9 = vadd.f32 %v581_v2, %v531_v56 }
 0x26d   : > { %v586_v10 = vmul.f32 1.442695, %v584_v4  ;;  %v594_v11 = vmul.f32 1.442695, %v592_v5  ;;  %v585_v12 = vsub.f32 %v513_v55, %v583_v6  ;;  %v593_v13 = vsub.f32 %v574_v62, %v583_v6 }
 0x26e   : > { %921 = vpow2.f32 %v518_v7  ;;  %v633_v52 = vrot.slane %v632_v51, 4 }
 0x26f   : > { %923 = vpow2.f32 %v526_v8  ;;  %v588_v14 = vmul.f32 1.442695, %v585_v12  ;;  %v596_v16 = vmul.f32 1.442695, %v593_v13 }
 0x270   : > { %v910_v15 = vpop.eup %909  ;;  %925 = vpow2.f32 %v586_v10  ;;  %v634_v53 = vadd.f32 %v633_v52, %v632_v51 }
 0x271   : > { %v912_v17 = vpop.eup %911  ;;  %927 = vpow2.f32 %v594_v11 }
 0x272   : > { %v914_v18 = vpop.eup %913  ;;  %v458_v21 = vadd.f32 %v912_v17, %v910_v15  ;;  %929 = vpow2.f32 %v588_v14  ;;  %v635_v54 = vrot.slane %v634_v53, 2 }
 0x273   : > { %v916_v22 = vpop.eup %915  ;;  %931 = vpow2.f32 %v596_v16 }
 0x274   : > { %v459_v23 = vadd.f32 %v916_v22, %v914_v18  ;;  %v636_v58 = vadd.f32 %v635_v54, %v634_v53 }
 0x275   : > { %v918_v24 = vpop.eup %917 }
 0x276   : > { %v920_v25 = vpop.eup %919  ;;  %v520_v26 = vmul.f32 %v918_v24, %v458_v21 }
 0x278   : > { %v922_v27 = vpop.eup %921  ;;  %v528_v28 = vadd.f32 %v920_v25, %v520_v26 }
 0x279   : > { %v924_v29 = vpop.eup %923  ;;  %v521_v30 = vmul.f32 %v922_v27, %v459_v23 }
 0x27a   : > { %v926_v31 = vpop.eup %925 }
 0x27b   : > { %v928_v32 = vpop.eup %927  ;;  %v529_v33 = vadd.f32 %v924_v29, %v521_v30  ;;  %v590_v34 = vmul.f32 %v926_v31, %v528_v28 }
 0x27c   : > { %v930_v35 = vpop.eup %929 }
 0x27d   : > { %v591_v36 = vmul.f32 %v930_v35, %v529_v33  ;;  %v598_v37 = vadd.f32 %v928_v32, %v590_v34  ;;  %v932_v38 = vpop.eup %931 }
 0x27f   : > { %v599_v39 = vadd.f32 %v932_v38, %v591_v36  ;;  %933 = vlog2.f32 %v598_v37 }
 0x281   : > { %935 = vlog2.f32 %v599_v39 }
 0x289   : > { %v934_v40 = vpop.eup %933 }
 0x28a   : > { %v603_v41 = vmul.f32 0.6931472, %v934_v40 }
 0x28b   : > { %v936_v42 = vpop.eup %935 }
 0x28c   : > { %v605_v43 = vmul.f32 0.6931472, %v936_v42  ;;  %v606_v44 = vadd.f32 %v603_v41, %v582_v61  ;;  %v637_v61 = vrot.slane %v636_v58, 1 }
 0x28e   : > { %v607_v45 = vadd.f32 %v605_v43, %v583_v6  ;;  %v610_v46 = vsub.f32 %v606_v44, %v600_v1  ;;  %v638_v63 = vadd.f32 %v637_v61, %v636_v58 }
 0x290   : > { %v611_v47 = vsub.f32 %v607_v45, %v601_v9  ;;  %v612_v48 = vsel %vm608_vm3, %v610_v46, 0.0 }
 0x292   : > { %v613_v49 = vsel %vm609_vm4, %v611_v47, 0.0 }
 0x293   : > { %v614_v50 = vadd.f32 %v613_v49, %v612_v48 }
 0x295   : > { %615 = vadd.xlane.f32.xlu1 %v614_v50 }
 0x322   : > { %v616_v55 = vpop.xlane.xlu1 %615 }
 0x323   : > { %v617_v56 = vrot.slane %v616_v55, 4 }
 0x325   : > { %v618_v57 = vadd.f32 %v617_v56, %v616_v55 }
 0x327   : > { %v619_v59 = vrot.slane %v618_v57, 2 }
 0x329   : > { %v620_v60 = vadd.f32 %v619_v59, %v618_v57 }
 0x32b   : > { %v621_v19 = vrot.slane %v620_v60, 1 }
 0x32d   : > { %v622_v62 = vadd.f32 %v621_v19, %v620_v60 }
 0x32f   : > { %838 = vpush %v622_v62 }
 0x330   : > { %840 = vpush %v638_v63 }
 0x360   : > { %s839_s5 = spop %838 }
 0x361   : > { %625 = sst [smem:[%s257_s26]] %s839_s5  ;;  %s841_s8 = spop %840 }
 0x362   : > { %641 = sst [smem:[%s640_s29]] %s841_s8 }
 0x363   : > { %978 = shalt.err (!%p975_p9)
}
 0x364   : > { %846 = dma.smem_to_hbm (%p1269_p10), %s257_s26, 16, %s655_s7, %s643_s9  }
 0x365 PF: > { %p792_p12 = scmp.lt.s32.totalorder %s1033_s20, 2 }
 0x366   : > { %s667_s21 = sand.u32 (!%p792_p12), 1, %s1013_s15   ;;  %p1270_p0 = scmp.ne.s32.totalorder (!%p792_p12), %s1263_s27, 0 }
 0x367   : > { %662 = sbr.rel (%p792_p12) target bundleno = 881 (0x371), region = 48  ;;  %s668_s22 = scalar_lea.sflag (!%p792_p12), [#allocation4], %s667_s21 }
 0x36e   : > { %1008 = dma.done.wait (%p1270_p0), %s668_s22, 16  }
 0x36f   : > { %1010 = vsyncadd (%p1270_p0), %s668_s22, 4294967280 }
 0x370   : > { %673 = sfence }
 0x371 PF: > { %s18_s20 = sadd.s32 1, %s1033_s20   ;;  %s1271_s15 = smov %s1017_s16 }
 0x372   : > { %p15_p2 = scmp.ge.s32.totalorder %s18_s20, 4   ;;  %s1272_s16 = smov %s1021_s17 }
 0x373   : > { %s1273_s17 = smov %s1119_s28  ;;  %s1274_s18 = smov %s1029_s19 }
 0x374   : > { %s1275_s19 = smov %s1277_s23  ;;  %17 = sbr.rel (!%p15_p2) target bundleno = 5 (0x5), region = 84 }
 0x37b   :  { %674 = vsyncpa [#allocation3], 1 }
 0x37c   :  { %676 = vsyncpa [#allocation3 + $0x1], 1 }
 0x37d   :  { %677 = vsyncpa [#allocation4], 1 }
 0x37e   :  { %679 = vsyncpa [#allocation4 + $0x1], 1 }

</bundles_post_ra>
